<compile_context>
chip_gen: v7x
topology: tpu7x:2x2x1
jax: 0.10.0
libtpu: 0.0.40
codegen_flags: <defaults>
</compile_context>

<pallas_src>
import math

import jax
import jax.numpy as jnp
from jax import lax
from jax.experimental import pallas as pl
from jax.experimental.pallas import tpu as pltpu


# --------------------------------------------------------------------------
# helpers
# --------------------------------------------------------------------------

def _pick_tile(dim, cap, align):
    """Largest divisor of `dim` <= cap, preferring multiples of `align`."""
    if dim <= cap:
        return dim
    fallback = dim
    for t in range(cap, 0, -1):
        if dim % t == 0:
            if t % align == 0:
                return t
            if fallback == dim:
                fallback = t
    return fallback


# --------------------------------------------------------------------------
# tiled batched linear:  out[p] = x[p] @ w[p] + b[p]
# --------------------------------------------------------------------------

def _linear_kernel(x_ref, w_ref, b_ref, o_ref, acc_ref):
    k = pl.program_id(3)

    @pl.when(k == 0)
    def _init():
        acc_ref[...] = jnp.zeros_like(acc_ref)

    acc_ref[...] += jnp.dot(x_ref[0], w_ref[0],
                            preferred_element_type=jnp.float32)

    @pl.when(k == pl.num_programs(3) - 1)
    def _done():
        o_ref[0] = (acc_ref[...] + b_ref[0]).astype(o_ref.dtype)


def _multi_linear(xs, ws, bs, *, out_dtype,
                  tm_cap=256, tn_cap=512, tk_cap=512):
    """xs: (P, N, d_in) bf16, ws: (P, d_in, d_out) bf16, bs: (P, 1, d_out) f32."""
    P, N, d_in = xs.shape
    d_out = ws.shape[-1]
    tm = _pick_tile(N, tm_cap, 8)
    tn = _pick_tile(d_out, tn_cap, 128)
    tk = _pick_tile(d_in, tk_cap, 128)
    grid = (P, N // tm, d_out // tn, d_in // tk)
    return pl.pallas_call(
        _linear_kernel,
        out_shape=jax.ShapeDtypeStruct((P, N, d_out), out_dtype),
        grid=grid,
        in_specs=[
            pl.BlockSpec((1, tm, tk), lambda p, i, j, k: (p, i, k)),
            pl.BlockSpec((1, tk, tn), lambda p, i, j, k: (p, k, j)),
            pl.BlockSpec((1, 1, tn), lambda p, i, j, k: (p, 0, j)),
        ],
        out_specs=pl.BlockSpec((1, tm, tn), lambda p, i, j, k: (p, i, j)),
        scratch_shapes=[pltpu.VMEM((tm, tn), jnp.float32)],
        compiler_params=pltpu.CompilerParams(
            dimension_semantics=("parallel", "parallel", "parallel", "arbitrary")),
    )(xs, ws, bs)


# --------------------------------------------------------------------------
# head-fused, lane-dense flash attention (online softmax over KV tiles)
# --------------------------------------------------------------------------

def _make_attn_kernel(h, d_k, scale, masked):
    def kernel(*refs):
        if masked:
            q_ref, k_ref, v_ref, b_ref, o_ref, acc_ref, m_ref, l_ref = refs
        else:
            q_ref, k_ref, v_ref, o_ref, acc_ref, m_ref, l_ref = refs

        ki = pl.program_id(2)

        @pl.when(ki == 0)
        def _init():
            acc_ref[...] = jnp.zeros_like(acc_ref)
            m_ref[...] = jnp.full(m_ref.shape, -jnp.inf, dtype=jnp.float32)
            l_ref[...] = jnp.zeros_like(l_ref)

        qt = q_ref[0]                       # (tq,  d_model) bf16
        kt = k_ref[0]                       # (tkv, d_model) bf16
        vt = v_ref[0]                       # (tkv, d_model) bf16
        bias = b_ref[0] if masked else None  # (1|tq, tkv) f32 additive bias

        m_prev = m_ref[...]                 # (tq, h) f32
        l_prev = l_ref[...]                 # (tq, h) f32
        acc_prev = acc_ref[...]             # (tq, d_model) f32

        new_m, new_l, new_acc = [], [], []
        for hh in range(h):                 # static unroll over heads
            sl = slice(hh * d_k, (hh + 1) * d_k)
            # scores: contract on last axes of q/k slices (no explicit transpose)
            s = lax.dot_general(qt[:, sl], kt[:, sl],
                                (((1,), (1,)), ((), ())),
                                preferred_element_type=jnp.float32) * scale
            if masked:
                s = s + bias
            m_h = m_prev[:, hh:hh + 1]
            m_n = jnp.maximum(m_h, jnp.max(s, axis=-1, keepdims=True))
            alpha = jnp.exp(m_h - m_n)
            p = jnp.exp(s - m_n)            # f32 softmax numerator
            l_n = alpha * l_prev[:, hh:hh + 1] + jnp.sum(p, axis=-1, keepdims=True)
            pv = jnp.dot(p.astype(vt.dtype), vt[:, sl],
                         preferred_element_type=jnp.float32)
            new_m.append(m_n)
            new_l.append(l_n)
            new_acc.append(alpha * acc_prev[:, sl] + pv)

        # single lane-dense store per scratch buffer
        m_ref[...] = jnp.concatenate(new_m, axis=1)
        l_ref[...] = jnp.concatenate(new_l, axis=1)
        acc_ref[...] = jnp.concatenate(new_acc, axis=1)

        @pl.when(ki == pl.num_programs(2) - 1)
        def _finalize():
            l_all = l_ref[...]
            acc_all = acc_ref[...]
            outs = []
            for hh in range(h):
                inv = pl.reciprocal(l_all[:, hh:hh + 1], approx=True)
                outs.append(acc_all[:, hh * d_k:(hh + 1) * d_k] * inv)
            # one full-width (lane-dense) store of the merged-head context
            o_ref[0] = jnp.concatenate(outs, axis=1).astype(o_ref.dtype)

    return kernel


def _attention(q, k, v, bias, *, h, tq_cap=256, tkv_cap=512):
    """q: (B,Sq,d_model) bf16, k/v: (B,Sk,d_model) bf16, bias: None or (B,1|Sq,Sk) f32."""
    B, Sq, d_model = q.shape
    Sk = k.shape[1]
    d_k = d_model // h
    scale = 1.0 / math.sqrt(d_k)
    tq = _pick_tile(Sq, tq_cap, 8)
    tkv = _pick_tile(Sk, tkv_cap, 128)
    masked = bias is not None

    in_specs = [
        pl.BlockSpec((1, tq, d_model), lambda b, qi, ki: (b, qi, 0)),
        pl.BlockSpec((1, tkv, d_model), lambda b, qi, ki: (b, ki, 0)),
        pl.BlockSpec((1, tkv, d_model), lambda b, qi, ki: (b, ki, 0)),
    ]
    args = [q, k, v]
    if masked:
        mq = bias.shape[1]
        if mq == 1:
            in_specs.append(pl.BlockSpec((1, 1, tkv), lambda b, qi, ki: (b, 0, ki)))
        else:
            in_specs.append(pl.BlockSpec((1, tq, tkv), lambda b, qi, ki: (b, qi, ki)))
        args.append(bias)

    return pl.pallas_call(
        _make_attn_kernel(h, d_k, scale, masked),
        out_shape=jax.ShapeDtypeStruct((B, Sq, d_model), q.dtype),
        grid=(B, Sq // tq, Sk // tkv),
        in_specs=in_specs,
        out_specs=pl.BlockSpec((1, tq, d_model), lambda b, qi, ki: (b, qi, 0)),
        scratch_shapes=[
            pltpu.VMEM((tq, d_model), jnp.float32),   # acc
            pltpu.VMEM((tq, h), jnp.float32),         # running max  m
            pltpu.VMEM((tq, h), jnp.float32),         # running sum  l
        ],
        compiler_params=pltpu.CompilerParams(
            dimension_semantics=("parallel", "parallel", "arbitrary")),
    )(*args)


# --------------------------------------------------------------------------
# MultiHeadedAttention forward (eval mode)
# --------------------------------------------------------------------------

def multi_headed_attention(params, query, key, value, mask=None, *, h):
    wq, b_q, wk, b_k, wv, b_v, wo, b_o = params
    B, Sq, d_model = query.shape
    Sk = key.shape[1]
    assert d_model % h == 0
    bf16 = jnp.bfloat16

    qx = query.reshape(B * Sq, d_model).astype(bf16)
    kx = key.reshape(B * Sk, d_model).astype(bf16)
    vx = value.reshape(B * Sk, d_model).astype(bf16)

    if Sq == Sk:
        # fused Q/K/V projection: one pallas_call over a stacked (3, N, d_model) input
        xs = jnp.stack([qx, kx, vx])
        ws = jnp.stack([wq, wk, wv]).astype(bf16)
        bs = jnp.stack([b_q, b_k, b_v]).reshape(3, 1, d_model)
        qkv = _multi_linear(xs, ws, bs, out_dtype=bf16)
        q, k, v = qkv[0], qkv[1], qkv[2]
    else:
        # cross-attention with different seq lengths: Q alone, K/V fused
        q = _multi_linear(qx[None], wq.astype(bf16)[None],
                          b_q.reshape(1, 1, d_model), out_dtype=bf16)[0]
        kv = _multi_linear(jnp.stack([kx, vx]),
                           jnp.stack([wk, wv]).astype(bf16),
                           jnp.stack([b_k, b_v]).reshape(2, 1, d_model),
                           out_dtype=bf16)
        k, v = kv[0], kv[1]

    q = q.reshape(B, Sq, d_model)
    k = k.reshape(B, Sk, d_model)
    v = v.reshape(B, Sk, d_model)

    # mask -> compact additive f32 bias (B, 1|Sq, Sk); None path skips mask entirely
    bias = None
    if mask is not None:
        m = mask
        if m.ndim == 2:              # (B, Sk) key-padding mask
            m = m[:, None, :]
        bias = jnp.where(m == 0, jnp.float32(-1e9), jnp.float32(0.0))

    # heads stay as contiguous d_k lane slices of d_model -> no transposes needed,
    # attention output is already in the PyTorch merged-head layout.
    ctx = _attention(q, k, v, bias, h=h)

    out = _multi_linear(ctx.reshape(1, B * Sq, d_model),
                        wo.astype(bf16)[None],
                        b_o.reshape(1, 1, d_model),
                        out_dtype=jnp.float32)
    return out[0].reshape(B, Sq, d_model)


# --------------------------------------------------------------------------
# reference (plain JAX, f32)
# --------------------------------------------------------------------------

def ref_mha(params, query, key, value, mask, *, h):
    wq, b_q, wk, b_k, wv, b_v, wo, b_o = params
    B, Sq, d_model = query.shape
    Sk = key.shape[1]
    d_k = d_model // h

    def lin(x, w, b):
        return x @ w + b

    q = lin(query, wq, b_q).reshape(B, Sq, h, d_k).transpose(0, 2, 1, 3)
    k = lin(key, wk, b_k).reshape(B, Sk, h, d_k).transpose(0, 2, 1, 3)
    v = lin(value, wv, b_v).reshape(B, Sk, h, d_k).transpose(0, 2, 1, 3)

    scores = jnp.einsum("bhqd,bhkd->bhqk", q, k) / math.sqrt(d_k)
    if mask is not None:
        m = mask if mask.ndim == 3 else mask[:, None, :]
        scores = jnp.where(m[:, None, :, :] == 0, -1e9, scores)
    p = jax.nn.softmax(scores, axis=-1)
    x = jnp.einsum("bhqk,bhkd->bhqd", p, v)
    x = x.transpose(0, 2, 1, 3).reshape(B, Sq, h * d_k)
    return lin(x, wo, b_o)


# --------------------------------------------------------------------------
# main
# --------------------------------------------------------------------------

if __name__ == "__main__":
    B, S, d_model, h = 2, 8, 32, 4

    keys = jax.random.split(jax.random.PRNGKey(0), 12)

    # Deterministic parameter init (W stored as (in, out) == PyTorch weight.T).
    bound = 1.0 / math.sqrt(d_model)
    params = []
    for i in range(4):
        w = jax.random.uniform(keys[i], (d_model, d_model), jnp.float32, -bound, bound)
        b = jax.random.uniform(keys[4 + i], (d_model,), jnp.float32, -bound, bound)
        params.extend([w, b])
    params = tuple(params)

    query = jax.random.normal(keys[8], (B, S, d_model), jnp.float32)
    key_ = jax.random.normal(keys[9], (B, S, d_model), jnp.float32)
    value = jax.random.normal(keys[10], (B, S, d_model), jnp.float32)

    mha = jax.jit(multi_headed_attention, static_argnames=("h",))

    # (1) compact key-padding mask (B, 1, Sk): batch 1 cannot see last 2 keys.
    key_valid = jnp.ones((B, S), jnp.int32).at[1, -2:].set(0)
    pad_mask = key_valid[:, None, :]
    out = jax.block_until_ready(mha(params, query, key_, value, pad_mask, h=h))
    ref = ref_mha(params, query, key_, value, pad_mask, h=h)
    assert out.shape == (B, S, d_model)
    assert jnp.allclose(out, ref, atol=5e-2, rtol=5e-2), "mismatch (padding mask)"

    # (2) full (B, Sq, Sk) mask: causal AND key padding.
    full_mask = jnp.tril(jnp.ones((S, S), jnp.int32))[None, :, :] * key_valid[:, None, :]
    out_f = jax.block_until_ready(mha(params, query, key_, value, full_mask, h=h))
    ref_f = ref_mha(params, query, key_, value, full_mask, h=h)
    assert jnp.allclose(out_f, ref_f, atol=5e-2, rtol=5e-2), "mismatch (full mask)"

    # (3) mask=None path (no mask DMA / no select kernel variant).
    out_n = jax.block_until_ready(mha(params, query, key_, value, None, h=h))
    ref_n = ref_mha(params, query, key_, value, None, h=h)
    assert jnp.allclose(out_n, ref_n, atol=5e-2, rtol=5e-2), "mismatch (no mask)"

    print("KERNEL_OK")
</pallas_src>

<mosaic_0001>
module attributes {stable_mosaic.version = 11 : i64} {
  func.func @_linear_kernel(%arg0: i32, %arg1: i32, %arg2: i32, %arg3: i32, %arg4: memref<1x16x32xbf16, #tpu.memory_space<vmem>>, %arg5: memref<1x32x32xbf16, #tpu.memory_space<vmem>>, %arg6: memref<1x1x32xf32, #tpu.memory_space<vmem>>, %arg7: memref<1x16x32xbf16, #tpu.memory_space<vmem>>, %arg8: memref<16x32xf32, #tpu.memory_space<vmem>>) attributes {dimension_semantics = [#tpu.dimension_semantics<parallel>, #tpu.dimension_semantics<parallel>, #tpu.dimension_semantics<parallel>, #tpu.dimension_semantics<arbitrary>], iteration_bounds = array<i64: 3, 1, 1, 1>, scalar_prefetch = 0 : i64, scratch_operands = 1 : i64, tpu.core_type = #tpu.core_type<tc>, window_params = [{transform_indices = @transform_0, window_bounds = array<i64: 1, 16, 32>}, {transform_indices = @transform_1, window_bounds = array<i64: 1, 32, 32>}, {transform_indices = @transform_2, window_bounds = array<i64: 1, 1, 32>}, {transform_indices = @transform_3, window_bounds = array<i64: 1, 16, 32>}]} {
    %c0_i32 = arith.constant 0 : i32
    %0 = arith.cmpi eq, %arg3, %c0_i32 : i32
    %1 = arith.extui %0 : i1 to i32
    %c0_i32_0 = arith.constant 0 : i32
    %2 = arith.cmpi ne, %1, %c0_i32_0 : i32
    scf.if %2 {
      %cst_12 = arith.constant 0.000000e+00 : f32
      %14 = vector.broadcast %cst_12 : f32 to vector<16x32xf32>
      %c0_13 = arith.constant 0 : index
      %c0_14 = arith.constant 0 : index
      %15 = vector.load %arg8[%c0_13, %c0_14] : memref<16x32xf32, #tpu.memory_space<vmem>>, vector<16x32xf32>
      tpu.vector_store %arg8[%c0_13, %c0_14], %14 {strides = array<i32>} : memref<16x32xf32, #tpu.memory_space<vmem>>, vector<16x32xf32>,
    } else {
    }
    %c0 = arith.constant 0 : index
    %c0_1 = arith.constant 0 : index
    %3 = vector.load %arg8[%c0, %c0_1] : memref<16x32xf32, #tpu.memory_space<vmem>>, vector<16x32xf32>
    %c0_2 = arith.constant 0 : index
    %c0_3 = arith.constant 0 : index
    %c0_4 = arith.constant 0 : index
    %4 = vector.load %arg4[%c0_2, %c0_3, %c0_4] : memref<1x16x32xbf16, #tpu.memory_space<vmem>>, vector<1x16x32xbf16>
    %5 = vector.shape_cast %4 : vector<1x16x32xbf16> to vector<16x32xbf16>
    %c0_5 = arith.constant 0 : index
    %c0_6 = arith.constant 0 : index
    %c0_7 = arith.constant 0 : index
    %6 = vector.load %arg5[%c0_5, %c0_6, %c0_7] : memref<1x32x32xbf16, #tpu.memory_space<vmem>>, vector<1x32x32xbf16>
    %7 = vector.shape_cast %6 : vector<1x32x32xbf16> to vector<32x32xbf16>
    %cst = arith.constant dense<0.000000e+00> : vector<16x32xf32>
    %8 = tpu.matmul %5, %7, %cst {dimension_numbers = #tpu.dot_dimension_numbers<[1], [0], [0], [1], [0, 0, 1, 1], [], []>} : vector<16x32xbf16>, vector<32x32xbf16>, vector<16x32xf32> -> vector<16x32xf32>
    %9 = arith.addf %3, %8 : vector<16x32xf32>
    %c0_8 = arith.constant 0 : index
    %c0_9 = arith.constant 0 : index
    %10 = vector.load %arg8[%c0_8, %c0_9] : memref<16x32xf32, #tpu.memory_space<vmem>>, vector<16x32xf32>
    tpu.vector_store %arg8[%c0_8, %c0_9], %9 {strides = array<i32>} : memref<16x32xf32, #tpu.memory_space<vmem>>, vector<16x32xf32>,
    %c0_i32_10 = arith.constant 0 : i32
    %11 = arith.cmpi eq, %arg3, %c0_i32_10 : i32
    %12 = arith.extui %11 : i1 to i32
    %c0_i32_11 = arith.constant 0 : i32
    %13 = arith.cmpi ne, %12, %c0_i32_11 : i32
    scf.if %13 {
      %c0_12 = arith.constant 0 : index
      %c0_13 = arith.constant 0 : index
      %14 = vector.load %arg8[%c0_12, %c0_13] : memref<16x32xf32, #tpu.memory_space<vmem>>, vector<16x32xf32>
      %c0_14 = arith.constant 0 : index
      %c0_15 = arith.constant 0 : index
      %c0_16 = arith.constant 0 : index
      %15 = vector.load %arg6[%c0_14, %c0_15, %c0_16] : memref<1x1x32xf32, #tpu.memory_space<vmem>>, vector<1x1x32xf32>
      %16 = vector.shape_cast %15 : vector<1x1x32xf32> to vector<1x32xf32>
      %17 = vector.broadcast %16 : vector<1x32xf32> to vector<16x32xf32>
      %18 = arith.addf %14, %17 : vector<16x32xf32>
      %19 = arith.truncf %18 : vector<16x32xf32> to vector<16x32xbf16>
      %c0_17 = arith.constant 0 : index
      %c0_18 = arith.constant 0 : index
      %c0_19 = arith.constant 0 : index
      %20 = vector.load %arg7[%c0_17, %c0_18, %c0_19] : memref<1x16x32xbf16, #tpu.memory_space<vmem>>, vector<1x16x32xbf16>
      %21 = vector.shape_cast %20 : vector<1x16x32xbf16> to vector<16x32xbf16>
      %22 = vector.shape_cast %19 : vector<16x32xbf16> to vector<1x16x32xbf16>
      tpu.vector_store %arg7[%c0_17, %c0_18, %c0_19], %22 {strides = array<i32>} : memref<1x16x32xbf16, #tpu.memory_space<vmem>>, vector<1x16x32xbf16>,
    } else {
    }
    return
  }
  func.func @transform_0(%arg0: i32, %arg1: i32, %arg2: i32, %arg3: i32) -> (i32, i32, i32) {
    %c0_i32 = arith.constant 0 : i32
    return %arg0, %arg1, %arg3 : i32, i32, i32
  }
  func.func @transform_1(%arg0: i32, %arg1: i32, %arg2: i32, %arg3: i32) -> (i32, i32, i32) {
    %c0_i32 = arith.constant 0 : i32
    return %arg0, %arg3, %arg2 : i32, i32, i32
  }
  func.func @transform_2(%arg0: i32, %arg1: i32, %arg2: i32, %arg3: i32) -> (i32, i32, i32) {
    %c0_i32 = arith.constant 0 : i32
    %c0_i32_0 = arith.constant 0 : i32
    return %arg0, %c0_i32, %arg2 : i32, i32, i32
  }
  func.func @transform_3(%arg0: i32, %arg1: i32, %arg2: i32, %arg3: i32) -> (i32, i32, i32) {
    %c0_i32 = arith.constant 0 : i32
    return %arg0, %arg1, %arg2 : i32, i32, i32
  }
}

module attributes {stable_mosaic.version = 11 : i64} {
  func.func @_linear_kernel(%arg0: i32, %arg1: i32, %arg2: i32, %arg3: i32, %arg4: memref<1x16x32xbf16, #tpu.memory_space<vmem>>, %arg5: memref<1x32x32xbf16, #tpu.memory_space<vmem>>, %arg6: memref<1x1x32xf32, #tpu.memory_space<vmem>>, %arg7: memref<1x16x32xf32, #tpu.memory_space<vmem>>, %arg8: memref<16x32xf32, #tpu.memory_space<vmem>>) attributes {dimension_semantics = [#tpu.dimension_semantics<parallel>, #tpu.dimension_semantics<parallel>, #tpu.dimension_semantics<parallel>, #tpu.dimension_semantics<arbitrary>], iteration_bounds = array<i64: 1, 1, 1, 1>, scalar_prefetch = 0 : i64, scratch_operands = 1 : i64, tpu.core_type = #tpu.core_type<tc>, window_params = [{transform_indices = @transform_0, window_bounds = array<i64: 1, 16, 32>}, {transform_indices = @transform_1, window_bounds = array<i64: 1, 32, 32>}, {transform_indices = @transform_2, window_bounds = array<i64: 1, 1, 32>}, {transform_indices = @transform_3, window_bounds = array<i64: 1, 16, 32>}]} {
    %c0_i32 = arith.constant 0 : i32
    %0 = arith.cmpi eq, %arg3, %c0_i32 : i32
    %1 = arith.extui %0 : i1 to i32
    %c0_i32_0 = arith.constant 0 : i32
    %2 = arith.cmpi ne, %1, %c0_i32_0 : i32
    scf.if %2 {
      %cst_12 = arith.constant 0.000000e+00 : f32
      %14 = vector.broadcast %cst_12 : f32 to vector<16x32xf32>
      %c0_13 = arith.constant 0 : index
      %c0_14 = arith.constant 0 : index
      %15 = vector.load %arg8[%c0_13, %c0_14] : memref<16x32xf32, #tpu.memory_space<vmem>>, vector<16x32xf32>
      tpu.vector_store %arg8[%c0_13, %c0_14], %14 {strides = array<i32>} : memref<16x32xf32, #tpu.memory_space<vmem>>, vector<16x32xf32>,
    } else {
    }
    %c0 = arith.constant 0 : index
    %c0_1 = arith.constant 0 : index
    %3 = vector.load %arg8[%c0, %c0_1] : memref<16x32xf32, #tpu.memory_space<vmem>>, vector<16x32xf32>
    %c0_2 = arith.constant 0 : index
    %c0_3 = arith.constant 0 : index
    %c0_4 = arith.constant 0 : index
    %4 = vector.load %arg4[%c0_2, %c0_3, %c0_4] : memref<1x16x32xbf16, #tpu.memory_space<vmem>>, vector<1x16x32xbf16>
    %5 = vector.shape_cast %4 : vector<1x16x32xbf16> to vector<16x32xbf16>
    %c0_5 = arith.constant 0 : index
    %c0_6 = arith.constant 0 : index
    %c0_7 = arith.constant 0 : index
    %6 = vector.load %arg5[%c0_5, %c0_6, %c0_7] : memref<1x32x32xbf16, #tpu.memory_space<vmem>>, vector<1x32x32xbf16>
    %7 = vector.shape_cast %6 : vector<1x32x32xbf16> to vector<32x32xbf16>
    %cst = arith.constant dense<0.000000e+00> : vector<16x32xf32>
    %8 = tpu.matmul %5, %7, %cst {dimension_numbers = #tpu.dot_dimension_numbers<[1], [0], [0], [1], [0, 0, 1, 1], [], []>} : vector<16x32xbf16>, vector<32x32xbf16>, vector<16x32xf32> -> vector<16x32xf32>
    %9 = arith.addf %3, %8 : vector<16x32xf32>
    %c0_8 = arith.constant 0 : index
    %c0_9 = arith.constant 0 : index
    %10 = vector.load %arg8[%c0_8, %c0_9] : memref<16x32xf32, #tpu.memory_space<vmem>>, vector<16x32xf32>
    tpu.vector_store %arg8[%c0_8, %c0_9], %9 {strides = array<i32>} : memref<16x32xf32, #tpu.memory_space<vmem>>, vector<16x32xf32>,
    %c0_i32_10 = arith.constant 0 : i32
    %11 = arith.cmpi eq, %arg3, %c0_i32_10 : i32
    %12 = arith.extui %11 : i1 to i32
    %c0_i32_11 = arith.constant 0 : i32
    %13 = arith.cmpi ne, %12, %c0_i32_11 : i32
    scf.if %13 {
      %c0_12 = arith.constant 0 : index
      %c0_13 = arith.constant 0 : index
      %14 = vector.load %arg8[%c0_12, %c0_13] : memref<16x32xf32, #tpu.memory_space<vmem>>, vector<16x32xf32>
      %c0_14 = arith.constant 0 : index
      %c0_15 = arith.constant 0 : index
      %c0_16 = arith.constant 0 : index
      %15 = vector.load %arg6[%c0_14, %c0_15, %c0_16] : memref<1x1x32xf32, #tpu.memory_space<vmem>>, vector<1x1x32xf32>
      %16 = vector.shape_cast %15 : vector<1x1x32xf32> to vector<1x32xf32>
      %17 = vector.broadcast %16 : vector<1x32xf32> to vector<16x32xf32>
      %18 = arith.addf %14, %17 : vector<16x32xf32>
      %c0_17 = arith.constant 0 : index
      %c0_18 = arith.constant 0 : index
      %c0_19 = arith.constant 0 : index
      %19 = vector.load %arg7[%c0_17, %c0_18, %c0_19] : memref<1x16x32xf32, #tpu.memory_space<vmem>>, vector<1x16x32xf32>
      %20 = vector.shape_cast %19 : vector<1x16x32xf32> to vector<16x32xf32>
      %21 = vector.shape_cast %18 : vector<16x32xf32> to vector<1x16x32xf32>
      tpu.vector_store %arg7[%c0_17, %c0_18, %c0_19], %21 {strides = array<i32>} : memref<1x16x32xf32, #tpu.memory_space<vmem>>, vector<1x16x32xf32>,
    } else {
    }
    return
  }
  func.func @transform_0(%arg0: i32, %arg1: i32, %arg2: i32, %arg3: i32) -> (i32, i32, i32) {
    %c0_i32 = arith.constant 0 : i32
    return %arg0, %arg1, %arg3 : i32, i32, i32
  }
  func.func @transform_1(%arg0: i32, %arg1: i32, %arg2: i32, %arg3: i32) -> (i32, i32, i32) {
    %c0_i32 = arith.constant 0 : i32
    return %arg0, %arg3, %arg2 : i32, i32, i32
  }
  func.func @transform_2(%arg0: i32, %arg1: i32, %arg2: i32, %arg3: i32) -> (i32, i32, i32) {
    %c0_i32 = arith.constant 0 : i32
    %c0_i32_0 = arith.constant 0 : i32
    return %arg0, %c0_i32, %arg2 : i32, i32, i32
  }
  func.func @transform_3(%arg0: i32, %arg1: i32, %arg2: i32, %arg3: i32) -> (i32, i32, i32) {
    %c0_i32 = arith.constant 0 : i32
    return %arg0, %arg1, %arg2 : i32, i32, i32
  }
}

module attributes {stable_mosaic.version = 11 : i64} {
  func.func @kernel(%arg0: i32, %arg1: i32, %arg2: i32, %arg3: memref<1x8x32xbf16, #tpu.memory_space<vmem>>, %arg4: memref<1x8x32xbf16, #tpu.memory_space<vmem>>, %arg5: memref<1x8x32xbf16, #tpu.memory_space<vmem>>, %arg6: memref<1x1x8xf32, #tpu.memory_space<vmem>>, %arg7: memref<1x8x32xbf16, #tpu.memory_space<vmem>>, %arg8: memref<8x32xf32, #tpu.memory_space<vmem>>, %arg9: memref<8x4xf32, #tpu.memory_space<vmem>>, %arg10: memref<8x4xf32, #tpu.memory_space<vmem>>) attributes {dimension_semantics = [#tpu.dimension_semantics<parallel>, #tpu.dimension_semantics<parallel>, #tpu.dimension_semantics<arbitrary>], iteration_bounds = array<i64: 2, 1, 1>, scalar_prefetch = 0 : i64, scratch_operands = 3 : i64, tpu.core_type = #tpu.core_type<tc>, window_params = [{transform_indices = @transform_0, window_bounds = array<i64: 1, 8, 32>}, {transform_indices = @transform_1, window_bounds = array<i64: 1, 8, 32>}, {transform_indices = @transform_2, window_bounds = array<i64: 1, 8, 32>}, {transform_indices = @transform_3, window_bounds = array<i64: 1, 1, 8>}, {transform_indices = @transform_4, window_bounds = array<i64: 1, 8, 32>}]} {
    %c0_i32 = arith.constant 0 : i32
    %0 = arith.cmpi eq, %arg2, %c0_i32 : i32
    %1 = arith.extui %0 : i1 to i32
    %c0_i32_0 = arith.constant 0 : i32
    %2 = arith.cmpi ne, %1, %c0_i32_0 : i32
    scf.if %2 {
      %cst_45 = arith.constant 0.000000e+00 : f32
      %135 = vector.broadcast %cst_45 : f32 to vector<8x32xf32>
      %c0_46 = arith.constant 0 : index
      %c0_47 = arith.constant 0 : index
      %136 = vector.load %arg8[%c0_46, %c0_47] : memref<8x32xf32, #tpu.memory_space<vmem>>, vector<8x32xf32>
      tpu.vector_store %arg8[%c0_46, %c0_47], %135 {strides = array<i32>} : memref<8x32xf32, #tpu.memory_space<vmem>>, vector<8x32xf32>,
      %cst_48 = arith.constant 0xFF800000 : f32
      %137 = vector.broadcast %cst_48 : f32 to vector<8x4xf32>
      %c0_49 = arith.constant 0 : index
      %c0_50 = arith.constant 0 : index
      %138 = vector.load %arg9[%c0_49, %c0_50] : memref<8x4xf32, #tpu.memory_space<vmem>>, vector<8x4xf32>
      tpu.vector_store %arg9[%c0_49, %c0_50], %137 {strides = array<i32>} : memref<8x4xf32, #tpu.memory_space<vmem>>, vector<8x4xf32>,
      %cst_51 = arith.constant 0.000000e+00 : f32
      %139 = vector.broadcast %cst_51 : f32 to vector<8x4xf32>
      %c0_52 = arith.constant 0 : index
      %c0_53 = arith.constant 0 : index
      %140 = vector.load %arg10[%c0_52, %c0_53] : memref<8x4xf32, #tpu.memory_space<vmem>>, vector<8x4xf32>
      tpu.vector_store %arg10[%c0_52, %c0_53], %139 {strides = array<i32>} : memref<8x4xf32, #tpu.memory_space<vmem>>, vector<8x4xf32>,
    } else {
    }
    %c0 = arith.constant 0 : index
    %c0_1 = arith.constant 0 : index
    %c0_2 = arith.constant 0 : index
    %3 = vector.load %arg3[%c0, %c0_1, %c0_2] : memref<1x8x32xbf16, #tpu.memory_space<vmem>>, vector<1x8x32xbf16>
    %4 = vector.shape_cast %3 : vector<1x8x32xbf16> to vector<8x32xbf16>
    %c0_3 = arith.constant 0 : index
    %c0_4 = arith.constant 0 : index
    %c0_5 = arith.constant 0 : index
    %5 = vector.load %arg4[%c0_3, %c0_4, %c0_5] : memref<1x8x32xbf16, #tpu.memory_space<vmem>>, vector<1x8x32xbf16>
    %6 = vector.shape_cast %5 : vector<1x8x32xbf16> to vector<8x32xbf16>
    %c0_6 = arith.constant 0 : index
    %c0_7 = arith.constant 0 : index
    %c0_8 = arith.constant 0 : index
    %7 = vector.load %arg5[%c0_6, %c0_7, %c0_8] : memref<1x8x32xbf16, #tpu.memory_space<vmem>>, vector<1x8x32xbf16>
    %8 = vector.shape_cast %7 : vector<1x8x32xbf16> to vector<8x32xbf16>
    %c0_9 = arith.constant 0 : index
    %c0_10 = arith.constant 0 : index
    %c0_11 = arith.constant 0 : index
    %9 = vector.load %arg6[%c0_9, %c0_10, %c0_11] : memref<1x1x8xf32, #tpu.memory_space<vmem>>, vector<1x1x8xf32>
    %10 = vector.shape_cast %9 : vector<1x1x8xf32> to vector<1x8xf32>
    %c0_12 = arith.constant 0 : index
    %c0_13 = arith.constant 0 : index
    %11 = vector.load %arg9[%c0_12, %c0_13] : memref<8x4xf32, #tpu.memory_space<vmem>>, vector<8x4xf32>
    %c0_14 = arith.constant 0 : index
    %c0_15 = arith.constant 0 : index
    %12 = vector.load %arg10[%c0_14, %c0_15] : memref<8x4xf32, #tpu.memory_space<vmem>>, vector<8x4xf32>
    %c0_16 = arith.constant 0 : index
    %c0_17 = arith.constant 0 : index
    %13 = vector.load %arg8[%c0_16, %c0_17] : memref<8x32xf32, #tpu.memory_space<vmem>>, vector<8x32xf32>
    %14 = vector.extract_strided_slice %4 {offsets = [0, 0], sizes = [8, 8], strides = [1, 1]} : vector<8x32xbf16> to vector<8x8xbf16>
    %15 = vector.extract_strided_slice %6 {offsets = [0, 0], sizes = [8, 8], strides = [1, 1]} : vector<8x32xbf16> to vector<8x8xbf16>
    %cst = arith.constant dense<0.000000e+00> : vector<8x8xf32>
    %16 = tpu.matmul %14, %15, %cst {dimension_numbers = #tpu.dot_dimension_numbers<[1], [1], [0], [0], [0, 0, 1, 0], [], []>} : vector<8x8xbf16>, vector<8x8xbf16>, vector<8x8xf32> -> vector<8x8xf32>
    %cst_18 = arith.constant 0.353553385 : f32
    %17 = vector.broadcast %cst_18 : f32 to vector<8x8xf32>
    %18 = arith.mulf %16, %17 : vector<8x8xf32>
    %19 = vector.broadcast %10 : vector<1x8xf32> to vector<8x8xf32>
    %20 = arith.addf %18, %19 : vector<8x8xf32>
    %21 = vector.extract_strided_slice %11 {offsets = [0, 0], sizes = [8, 1], strides = [1, 1]} : vector<8x4xf32> to vector<8x1xf32>
    %cst_19 = arith.constant dense<0xFF800000> : vector<8xf32>
    %22 = vector.multi_reduction <maximumf>, %20, %cst_19 [1] : vector<8x8xf32> to vector<8xf32>
    %23 = vector.shape_cast %22 : vector<8xf32> to vector<8x1xf32>
    %24 = arith.maximumf %21, %23 : vector<8x1xf32>
    %25 = arith.subf %21, %24 : vector<8x1xf32>
    %26 = math.exp %25 : vector<8x1xf32>
    %27 = vector.broadcast %24 : vector<8x1xf32> to vector<8x8xf32>
    %28 = arith.subf %20, %27 : vector<8x8xf32>
    %29 = math.exp %28 : vector<8x8xf32>
    %30 = vector.extract_strided_slice %12 {offsets = [0, 0], sizes = [8, 1], strides = [1, 1]} : vector<8x4xf32> to vector<8x1xf32>
    %31 = arith.mulf %26, %30 : vector<8x1xf32>
    %cst_20 = arith.constant dense<0.000000e+00> : vector<8xf32>
    %32 = vector.multi_reduction <add>, %29, %cst_20 [1] : vector<8x8xf32> to vector<8xf32>
    %33 = vector.shape_cast %32 : vector<8xf32> to vector<8x1xf32>
    %34 = arith.addf %31, %33 : vector<8x1xf32>
    %35 = arith.truncf %29 : vector<8x8xf32> to vector<8x8xbf16>
    %36 = vector.extract_strided_slice %8 {offsets = [0, 0], sizes = [8, 8], strides = [1, 1]} : vector<8x32xbf16> to vector<8x8xbf16>
    %cst_21 = arith.constant dense<0.000000e+00> : vector<8x8xf32>
    %37 = tpu.matmul %35, %36, %cst_21 {dimension_numbers = #tpu.dot_dimension_numbers<[1], [0], [0], [1], [0, 0, 1, 1], [], []>} : vector<8x8xbf16>, vector<8x8xbf16>, vector<8x8xf32> -> vector<8x8xf32>
    %38 = vector.extract_strided_slice %13 {offsets = [0, 0], sizes = [8, 8], strides = [1, 1]} : vector<8x32xf32> to vector<8x8xf32>
    %39 = vector.broadcast %26 : vector<8x1xf32> to vector<8x8xf32>
    %40 = arith.mulf %39, %38 : vector<8x8xf32>
    %41 = arith.addf %40, %37 : vector<8x8xf32>
    %42 = vector.extract_strided_slice %4 {offsets = [0, 8], sizes = [8, 8], strides = [1, 1]} : vector<8x32xbf16> to vector<8x8xbf16>
    %43 = vector.extract_strided_slice %6 {offsets = [0, 8], sizes = [8, 8], strides = [1, 1]} : vector<8x32xbf16> to vector<8x8xbf16>
    %cst_22 = arith.constant dense<0.000000e+00> : vector<8x8xf32>
    %44 = tpu.matmul %42, %43, %cst_22 {dimension_numbers = #tpu.dot_dimension_numbers<[1], [1], [0], [0], [0, 0, 1, 0], [], []>} : vector<8x8xbf16>, vector<8x8xbf16>, vector<8x8xf32> -> vector<8x8xf32>
    %cst_23 = arith.constant 0.353553385 : f32
    %45 = vector.broadcast %cst_23 : f32 to vector<8x8xf32>
    %46 = arith.mulf %44, %45 : vector<8x8xf32>
    %47 = vector.broadcast %10 : vector<1x8xf32> to vector<8x8xf32>
    %48 = arith.addf %46, %47 : vector<8x8xf32>
    %49 = vector.extract_strided_slice %11 {offsets = [0, 1], sizes = [8, 1], strides = [1, 1]} : vector<8x4xf32> to vector<8x1xf32>
    %cst_24 = arith.constant dense<0xFF800000> : vector<8xf32>
    %50 = vector.multi_reduction <maximumf>, %48, %cst_24 [1] : vector<8x8xf32> to vector<8xf32>
    %51 = vector.shape_cast %50 : vector<8xf32> to vector<8x1xf32>
    %52 = arith.maximumf %49, %51 : vector<8x1xf32>
    %53 = arith.subf %49, %52 : vector<8x1xf32>
    %54 = math.exp %53 : vector<8x1xf32>
    %55 = vector.broadcast %52 : vector<8x1xf32> to vector<8x8xf32>
    %56 = arith.subf %48, %55 : vector<8x8xf32>
    %57 = math.exp %56 : vector<8x8xf32>
    %58 = vector.extract_strided_slice %12 {offsets = [0, 1], sizes = [8, 1], strides = [1, 1]} : vector<8x4xf32> to vector<8x1xf32>
    %59 = arith.mulf %54, %58 : vector<8x1xf32>
    %cst_25 = arith.constant dense<0.000000e+00> : vector<8xf32>
    %60 = vector.multi_reduction <add>, %57, %cst_25 [1] : vector<8x8xf32> to vector<8xf32>
    %61 = vector.shape_cast %60 : vector<8xf32> to vector<8x1xf32>
    %62 = arith.addf %59, %61 : vector<8x1xf32>
    %63 = arith.truncf %57 : vector<8x8xf32> to vector<8x8xbf16>
    %64 = vector.extract_strided_slice %8 {offsets = [0, 8], sizes = [8, 8], strides = [1, 1]} : vector<8x32xbf16> to vector<8x8xbf16>
    %cst_26 = arith.constant dense<0.000000e+00> : vector<8x8xf32>
    %65 = tpu.matmul %63, %64, %cst_26 {dimension_numbers = #tpu.dot_dimension_numbers<[1], [0], [0], [1], [0, 0, 1, 1], [], []>} : vector<8x8xbf16>, vector<8x8xbf16>, vector<8x8xf32> -> vector<8x8xf32>
    %66 = vector.extract_strided_slice %13 {offsets = [0, 8], sizes = [8, 8], strides = [1, 1]} : vector<8x32xf32> to vector<8x8xf32>
    %67 = vector.broadcast %54 : vector<8x1xf32> to vector<8x8xf32>
    %68 = arith.mulf %67, %66 : vector<8x8xf32>
    %69 = arith.addf %68, %65 : vector<8x8xf32>
    %70 = vector.extract_strided_slice %4 {offsets = [0, 16], sizes = [8, 8], strides = [1, 1]} : vector<8x32xbf16> to vector<8x8xbf16>
    %71 = vector.extract_strided_slice %6 {offsets = [0, 16], sizes = [8, 8], strides = [1, 1]} : vector<8x32xbf16> to vector<8x8xbf16>
    %cst_27 = arith.constant dense<0.000000e+00> : vector<8x8xf32>
    %72 = tpu.matmul %70, %71, %cst_27 {dimension_numbers = #tpu.dot_dimension_numbers<[1], [1], [0], [0], [0, 0, 1, 0], [], []>} : vector<8x8xbf16>, vector<8x8xbf16>, vector<8x8xf32> -> vector<8x8xf32>
    %cst_28 = arith.constant 0.353553385 : f32
    %73 = vector.broadcast %cst_28 : f32 to vector<8x8xf32>
    %74 = arith.mulf %72, %73 : vector<8x8xf32>
    %75 = vector.broadcast %10 : vector<1x8xf32> to vector<8x8xf32>
    %76 = arith.addf %74, %75 : vector<8x8xf32>
    %77 = vector.extract_strided_slice %11 {offsets = [0, 2], sizes = [8, 1], strides = [1, 1]} : vector<8x4xf32> to vector<8x1xf32>
    %cst_29 = arith.constant dense<0xFF800000> : vector<8xf32>
    %78 = vector.multi_reduction <maximumf>, %76, %cst_29 [1] : vector<8x8xf32> to vector<8xf32>
    %79 = vector.shape_cast %78 : vector<8xf32> to vector<8x1xf32>
    %80 = arith.maximumf %77, %79 : vector<8x1xf32>
    %81 = arith.subf %77, %80 : vector<8x1xf32>
    %82 = math.exp %81 : vector<8x1xf32>
    %83 = vector.broadcast %80 : vector<8x1xf32> to vector<8x8xf32>
    %84 = arith.subf %76, %83 : vector<8x8xf32>
    %85 = math.exp %84 : vector<8x8xf32>
    %86 = vector.extract_strided_slice %12 {offsets = [0, 2], sizes = [8, 1], strides = [1, 1]} : vector<8x4xf32> to vector<8x1xf32>
    %87 = arith.mulf %82, %86 : vector<8x1xf32>
    %cst_30 = arith.constant dense<0.000000e+00> : vector<8xf32>
    %88 = vector.multi_reduction <add>, %85, %cst_30 [1] : vector<8x8xf32> to vector<8xf32>
    %89 = vector.shape_cast %88 : vector<8xf32> to vector<8x1xf32>
    %90 = arith.addf %87, %89 : vector<8x1xf32>
    %91 = arith.truncf %85 : vector<8x8xf32> to vector<8x8xbf16>
    %92 = vector.extract_strided_slice %8 {offsets = [0, 16], sizes = [8, 8], strides = [1, 1]} : vector<8x32xbf16> to vector<8x8xbf16>
    %cst_31 = arith.constant dense<0.000000e+00> : vector<8x8xf32>
    %93 = tpu.matmul %91, %92, %cst_31 {dimension_numbers = #tpu.dot_dimension_numbers<[1], [0], [0], [1], [0, 0, 1, 1], [], []>} : vector<8x8xbf16>, vector<8x8xbf16>, vector<8x8xf32> -> vector<8x8xf32>
    %94 = vector.extract_strided_slice %13 {offsets = [0, 16], sizes = [8, 8], strides = [1, 1]} : vector<8x32xf32> to vector<8x8xf32>
    %95 = vector.broadcast %82 : vector<8x1xf32> to vector<8x8xf32>
    %96 = arith.mulf %95, %94 : vector<8x8xf32>
    %97 = arith.addf %96, %93 : vector<8x8xf32>
    %98 = vector.extract_strided_slice %4 {offsets = [0, 24], sizes = [8, 8], strides = [1, 1]} : vector<8x32xbf16> to vector<8x8xbf16>
    %99 = vector.extract_strided_slice %6 {offsets = [0, 24], sizes = [8, 8], strides = [1, 1]} : vector<8x32xbf16> to vector<8x8xbf16>
    %cst_32 = arith.constant dense<0.000000e+00> : vector<8x8xf32>
    %100 = tpu.matmul %98, %99, %cst_32 {dimension_numbers = #tpu.dot_dimension_numbers<[1], [1], [0], [0], [0, 0, 1, 0], [], []>} : vector<8x8xbf16>, vector<8x8xbf16>, vector<8x8xf32> -> vector<8x8xf32>
    %cst_33 = arith.constant 0.353553385 : f32
    %101 = vector.broadcast %cst_33 : f32 to vector<8x8xf32>
    %102 = arith.mulf %100, %101 : vector<8x8xf32>
    %103 = vector.broadcast %10 : vector<1x8xf32> to vector<8x8xf32>
    %104 = arith.addf %102, %103 : vector<8x8xf32>
    %105 = vector.extract_strided_slice %11 {offsets = [0, 3], sizes = [8, 1], strides = [1, 1]} : vector<8x4xf32> to vector<8x1xf32>
    %cst_34 = arith.constant dense<0xFF800000> : vector<8xf32>
    %106 = vector.multi_reduction <maximumf>, %104, %cst_34 [1] : vector<8x8xf32> to vector<8xf32>
    %107 = vector.shape_cast %106 : vector<8xf32> to vector<8x1xf32>
    %108 = arith.maximumf %105, %107 : vector<8x1xf32>
    %109 = arith.subf %105, %108 : vector<8x1xf32>
    %110 = math.exp %109 : vector<8x1xf32>
    %111 = vector.broadcast %108 : vector<8x1xf32> to vector<8x8xf32>
    %112 = arith.subf %104, %111 : vector<8x8xf32>
    %113 = math.exp %112 : vector<8x8xf32>
    %114 = vector.extract_strided_slice %12 {offsets = [0, 3], sizes = [8, 1], strides = [1, 1]} : vector<8x4xf32> to vector<8x1xf32>
    %115 = arith.mulf %110, %114 : vector<8x1xf32>
    %cst_35 = arith.constant dense<0.000000e+00> : vector<8xf32>
    %116 = vector.multi_reduction <add>, %113, %cst_35 [1] : vector<8x8xf32> to vector<8xf32>
    %117 = vector.shape_cast %116 : vector<8xf32> to vector<8x1xf32>
    %118 = arith.addf %115, %117 : vector<8x1xf32>
    %119 = arith.truncf %113 : vector<8x8xf32> to vector<8x8xbf16>
    %120 = vector.extract_strided_slice %8 {offsets = [0, 24], sizes = [8, 8], strides = [1, 1]} : vector<8x32xbf16> to vector<8x8xbf16>
    %cst_36 = arith.constant dense<0.000000e+00> : vector<8x8xf32>
    %121 = tpu.matmul %119, %120, %cst_36 {dimension_numbers = #tpu.dot_dimension_numbers<[1], [0], [0], [1], [0, 0, 1, 1], [], []>} : vector<8x8xbf16>, vector<8x8xbf16>, vector<8x8xf32> -> vector<8x8xf32>
    %122 = vector.extract_strided_slice %13 {offsets = [0, 24], sizes = [8, 8], strides = [1, 1]} : vector<8x32xf32> to vector<8x8xf32>
    %123 = vector.broadcast %110 : vector<8x1xf32> to vector<8x8xf32>
    %124 = arith.mulf %123, %122 : vector<8x8xf32>
    %125 = arith.addf %124, %121 : vector<8x8xf32>
    %126 = tpu.concatenate %24, %52, %80, %108 in 1 : vector<8x1xf32>, vector<8x1xf32>, vector<8x1xf32>, vector<8x1xf32> -> vector<8x4xf32>
    %c0_37 = arith.constant 0 : index
    %c0_38 = arith.constant 0 : index
    %127 = vector.load %arg9[%c0_37, %c0_38] : memref<8x4xf32, #tpu.memory_space<vmem>>, vector<8x4xf32>
    tpu.vector_store %arg9[%c0_37, %c0_38], %126 {strides = array<i32>} : memref<8x4xf32, #tpu.memory_space<vmem>>, vector<8x4xf32>,
    %128 = tpu.concatenate %34, %62, %90, %118 in 1 : vector<8x1xf32>, vector<8x1xf32>, vector<8x1xf32>, vector<8x1xf32> -> vector<8x4xf32>
    %c0_39 = arith.constant 0 : index
    %c0_40 = arith.constant 0 : index
    %129 = vector.load %arg10[%c0_39, %c0_40] : memref<8x4xf32, #tpu.memory_space<vmem>>, vector<8x4xf32>
    tpu.vector_store %arg10[%c0_39, %c0_40], %128 {strides = array<i32>} : memref<8x4xf32, #tpu.memory_space<vmem>>, vector<8x4xf32>,
    %130 = tpu.concatenate %41, %69, %97, %125 in 1 : vector<8x8xf32>, vector<8x8xf32>, vector<8x8xf32>, vector<8x8xf32> -> vector<8x32xf32>
    %c0_41 = arith.constant 0 : index
    %c0_42 = arith.constant 0 : index
    %131 = vector.load %arg8[%c0_41, %c0_42] : memref<8x32xf32, #tpu.memory_space<vmem>>, vector<8x32xf32>
    tpu.vector_store %arg8[%c0_41, %c0_42], %130 {strides = array<i32>} : memref<8x32xf32, #tpu.memory_space<vmem>>, vector<8x32xf32>,
    %c0_i32_43 = arith.constant 0 : i32
    %132 = arith.cmpi eq, %arg2, %c0_i32_43 : i32
    %133 = arith.extui %132 : i1 to i32
    %c0_i32_44 = arith.constant 0 : i32
    %134 = arith.cmpi ne, %133, %c0_i32_44 : i32
    scf.if %134 {
      %c0_45 = arith.constant 0 : index
      %c0_46 = arith.constant 0 : index
      %135 = vector.load %arg10[%c0_45, %c0_46] : memref<8x4xf32, #tpu.memory_space<vmem>>, vector<8x4xf32>
      %c0_47 = arith.constant 0 : index
      %c0_48 = arith.constant 0 : index
      %136 = vector.load %arg8[%c0_47, %c0_48] : memref<8x32xf32, #tpu.memory_space<vmem>>, vector<8x32xf32>
      %137 = vector.extract_strided_slice %135 {offsets = [0, 0], sizes = [8, 1], strides = [1, 1]} : vector<8x4xf32> to vector<8x1xf32>
      %138 = tpu.reciprocal %137 {approx = true} : vector<8x1xf32> -> vector<8x1xf32>
      %139 = vector.extract_strided_slice %136 {offsets = [0, 0], sizes = [8, 8], strides = [1, 1]} : vector<8x32xf32> to vector<8x8xf32>
      %140 = vector.broadcast %138 : vector<8x1xf32> to vector<8x8xf32>
      %141 = arith.mulf %139, %140 : vector<8x8xf32>
      %142 = vector.extract_strided_slice %135 {offsets = [0, 1], sizes = [8, 1], strides = [1, 1]} : vector<8x4xf32> to vector<8x1xf32>
      %143 = tpu.reciprocal %142 {approx = true} : vector<8x1xf32> -> vector<8x1xf32>
      %144 = vector.extract_strided_slice %136 {offsets = [0, 8], sizes = [8, 8], strides = [1, 1]} : vector<8x32xf32> to vector<8x8xf32>
      %145 = vector.broadcast %143 : vector<8x1xf32> to vector<8x8xf32>
      %146 = arith.mulf %144, %145 : vector<8x8xf32>
      %147 = vector.extract_strided_slice %135 {offsets = [0, 2], sizes = [8, 1], strides = [1, 1]} : vector<8x4xf32> to vector<8x1xf32>
      %148 = tpu.reciprocal %147 {approx = true} : vector<8x1xf32> -> vector<8x1xf32>
      %149 = vector.extract_strided_slice %136 {offsets = [0, 16], sizes = [8, 8], strides = [1, 1]} : vector<8x32xf32> to vector<8x8xf32>
      %150 = vector.broadcast %148 : vector<8x1xf32> to vector<8x8xf32>
      %151 = arith.mulf %149, %150 : vector<8x8xf32>
      %152 = vector.extract_strided_slice %135 {offsets = [0, 3], sizes = [8, 1], strides = [1, 1]} : vector<8x4xf32> to vector<8x1xf32>
      %153 = tpu.reciprocal %152 {approx = true} : vector<8x1xf32> -> vector<8x1xf32>
      %154 = vector.extract_strided_slice %136 {offsets = [0, 24], sizes = [8, 8], strides = [1, 1]} : vector<8x32xf32> to vector<8x8xf32>
      %155 = vector.broadcast %153 : vector<8x1xf32> to vector<8x8xf32>
      %156 = arith.mulf %154, %155 : vector<8x8xf32>
      %157 = tpu.concatenate %141, %146, %151, %156 in 1 : vector<8x8xf32>, vector<8x8xf32>, vector<8x8xf32>, vector<8x8xf32> -> vector<8x32xf32>
      %158 = arith.truncf %157 : vector<8x32xf32> to vector<8x32xbf16>
      %c0_49 = arith.constant 0 : index
      %c0_50 = arith.constant 0 : index
      %c0_51 = arith.constant 0 : index
      %159 = vector.load %arg7[%c0_49, %c0_50, %c0_51] : memref<1x8x32xbf16, #tpu.memory_space<vmem>>, vector<1x8x32xbf16>
      %160 = vector.shape_cast %159 : vector<1x8x32xbf16> to vector<8x32xbf16>
      %161 = vector.shape_cast %158 : vector<8x32xbf16> to vector<1x8x32xbf16>
      tpu.vector_store %arg7[%c0_49, %c0_50, %c0_51], %161 {strides = array<i32>} : memref<1x8x32xbf16, #tpu.memory_space<vmem>>, vector<1x8x32xbf16>,
    } else {
    }
    return
  }
  func.func @transform_0(%arg0: i32, %arg1: i32, %arg2: i32) -> (i32, i32, i32) {
    %c0_i32 = arith.constant 0 : i32
    %c0_i32_0 = arith.constant 0 : i32
    return %arg0, %arg1, %c0_i32 : i32, i32, i32
  }
  func.func @transform_1(%arg0: i32, %arg1: i32, %arg2: i32) -> (i32, i32, i32) {
    %c0_i32 = arith.constant 0 : i32
    %c0_i32_0 = arith.constant 0 : i32
    return %arg0, %arg2, %c0_i32 : i32, i32, i32
  }
  func.func @transform_2(%arg0: i32, %arg1: i32, %arg2: i32) -> (i32, i32, i32) {
    %c0_i32 = arith.constant 0 : i32
    %c0_i32_0 = arith.constant 0 : i32
    return %arg0, %arg2, %c0_i32 : i32, i32, i32
  }
  func.func @transform_3(%arg0: i32, %arg1: i32, %arg2: i32) -> (i32, i32, i32) {
    %c0_i32 = arith.constant 0 : i32
    %c0_i32_0 = arith.constant 0 : i32
    return %arg0, %c0_i32, %arg2 : i32, i32, i32
  }
  func.func @transform_4(%arg0: i32, %arg1: i32, %arg2: i32) -> (i32, i32, i32) {
    %c0_i32 = arith.constant 0 : i32
    %c0_i32_0 = arith.constant 0 : i32
    return %arg0, %arg1, %c0_i32 : i32, i32, i32
  }
}

</mosaic_0001>

<bundles_post_ra>
// kernel: multi_headed_attention.5
= control target key start
LH: loop header
LB: loop body
LE: loop exit
PB: predicated region body
PF: predicated region fallthrough
CT: control target
= control target key end

     0   :  { %v177_v1 = vmov 0.0   ;;  %vm178_vm0 = vmmov 0   ;;  %vm20_vm1 = vcmask 261120   ;;  %s233_s0 = inlined_call_operand.vmem [shape: bf16[1,16,32], index: 0, kind: input, shape index: {}]   ;;  %s234_s1 = inlined_call_operand.vmem [shape: bf16[1,32,32], index: 1, kind: input, shape index: {}]   ;;  %s235_s2 = inlined_call_operand.vmem [shape: f32[1,1,32], index: 2, kind: input, shape index: {}]   ;;  %s236_s3 = inlined_call_operand.hbm [shape: f32[1,16,32], index: 3, kind: output, shape index: {}]  }
   0x1   :  { %v150_v0 = vld [vmem:[%s234_s1] sm:$0xff]   ;;  %137 = vmatprep.subr.bf16.mxu0 %v177_v1  ;;  %v151_v2 = vld [vmem:[%s234_s1 + $0x8] sm:$0xff]   ;;  %141 = vmatprep.mubr.msk.bf16.mxu0 %vm178_vm0, %v177_v1  ;;  %21 = vst.msk [vmem:[#allocation2] sm:$0xff] %vm20_vm1, %v177_v1  ;;  %22 = vst.msk [vmem:[#allocation2 + $0x8] sm:$0xff] %vm20_vm1, %v177_v1 }
   0x2   :  { %138 = vmatpush3.bf16.msra.mxu0 %v150_v0 }
   0x3   :  { %139 = vmatprep.subr.bf16.mxu0 %v177_v1 }
   0x4   :  { %8 = vsyncpa [#allocation4], 0  ;;  %v152_v3 = vld [vmem:[%s233_s0] sm:$0xff]   ;;  %s179_s0 = smov [#allocation3]  }
   0x5   :  { %v133_v12 = vld [vmem:[%s235_s2] ss:$0 sm:$0xff]  ;;  %s118_s19 = sshll.u32 %s179_s0, 4  ;;  %s119_s19 = int_to_ptr.vmem [resolvable:$true] %s118_s19 }
   0x6   :  { %140 = vmatpush3.bf16.msra.mxu0 %v151_v2  ;;  %s153_s20 = scalar_lea.vmem %s119_s19, 256  ;;  %p158_p1 = scmp.lt.s32.totalorder %s119_s19, %s119_s19 }
   0x7   :  { %p154_p0 = scmp.ne.s32.totalorder %s119_s19, %s153_s20  ;;  %p159_p2 = scmp.lt.s32.totalorder %s153_s20, %s153_s20 }
   0x8   :  { %v23_v4 = vld [vmem:[#allocation2] sm:$0xff]  ;;  %v24_v6 = vld [vmem:[#allocation2 + $0x8] sm:$0xff] }
   0x9   :  { %142 = vmatmul.mubr.msk.bf16.vlgmr.msra.gmra.mrb[0].mxu0 %vm20_vm1, %v152_v3  ;;  %p160_p3 = por %p159_p2, %p158_p1 }
   0xb   :  { %p161_p4 = pnand %p160_p3, %p154_p0 }
  0xdc   :  { %v86_v5 = vpop.f32.mrb[0].mxu0 }
  0xdd   :  { %v93_v7 = vadd.f32 %v86_v5, %v23_v4  ;;  %v143_v8 = vpop.f32.mrb[1].mxu0 }
  0xde   :  { %v89_v9 = vpop.f32.mrb[2].mxu0 }
  0xdf   :  { %95 = vst.msk [vmem:[#allocation2] sm:$0xff] %vm20_vm1, %v93_v7  ;;  %v94_v10 = vadd.f32 %v89_v9, %v24_v6  ;;  %v144_v11 = vpop.f32.mrb[3].mxu0 }
  0xe1   :  { %96 = vst.msk [vmem:[#allocation2 + $0x8] sm:$0xff] %vm20_vm1, %v94_v10 }
  0xe6   :  { %v100_v13 = vld [vmem:[#allocation2] sm:$0xff] }
  0xe7   :  { %v109_v14 = vadd.f32 %v133_v12, %v100_v13 }
  0xe8   :  { %v101_v15 = vld [vmem:[#allocation2 + $0x8] sm:$0xff] }
  0xe9   :  { %v110_v16 = vadd.f32 %v133_v12, %v101_v15  ;;  %111 = vst.msk [vmem:[#allocation3] sm:$0xff] %vm20_vm1, %v109_v14 }
  0xeb   :  { %112 = vst.msk [vmem:[#allocation3 + $0x8] sm:$0xff] %vm20_vm1, %v110_v16 }
  0xec   :  { %164 = shalt.err (!%p161_p4)
}
  0xed   :  { %s165_s22 = scalar_lea.hbm %s236_s3, 256 }
  0xee   :  { %p166_p5 = scmp.ne.s32.totalorder %s236_s3, %s165_s22  ;;  %p169_p6 = scmp.lt.u32.totalorder %s165_s22, %s236_s3 }
  0xf0   :  { %p171_p7 = pnand %p169_p6, %p166_p5 }
  0xf2   :  { %174 = shalt.err (!%p171_p7)
}
  0xf3   :  { %s180_s27 = smov 128   ;;  %s181_s28 = smov 8  }
  0xf4   :  { %124 = dma.vmem_to_hbm [thread:$0]  %s119_s19, 256, %s236_s3, [#allocation4], %s180_s27, %s180_s27, %s181_s28  }
  0xf5   :  { %175 = dma.done.wait [#allocation4], 256  }
  0xf6   :  { %176 = vsyncadd [#allocation4], 4294967040 }
  0xf7   :  { %128 = vsyncpa [#allocation4], 1 }

// kernel: multi_headed_attention.3
= control target key start
LH: loop header
LB: loop body
LE: loop exit
PB: predicated region body
PF: predicated region fallthrough
CT: control target
= control target key end

     0   :  { %s672_s12 = smov 0   ;;  %s674_s13 = smov 0   ;;  %s716_s0 = inlined_call_operand.vmem [shape: bf16[3,16,32], index: 0, kind: input, shape index: {}]   ;;  %s717_s1 = inlined_call_operand.vmem [shape: bf16[3,32,32], index: 1, kind: input, shape index: {}]   ;;  %s718_s2 = inlined_call_operand.vmem [shape: f32[3,1,32], index: 2, kind: input, shape index: {}]   ;;  %s719_s3 = inlined_call_operand.vmem [shape: bf16[3,16,32], index: 3, kind: output, shape index: {}]  }
   0x1   :  { %s676_s14 = smov 0  }
   0x2 LB: > { %s39_s15 = sadd.s32 1, %s644_s13  ;;  %p565_p0 = scmp.ge.s32.totalorder %s648_s14, 1  ;;  %s648_s14 = sphi %s676_s14, %s13_s14   ;;  %s644_s13 = sphi %s674_s13, %s721_s13   ;;  %s640_s12 = sphi %s672_s12, %s720_s12  }
   0x3   : > { %p41_p1 = scmp.ge.s32.totalorder %s39_s15, 3  ;;  %p214_p2 = scmp.lt.s32.totalorder %s648_s14, 4 }
   0x5   : > { %s723_s15 = smov (%p41_p1, %s39_s15), 0  ;;  %p215_p3 = pnand %p565_p0, %p214_p2 }
   0x6   : > { %p271_p4 = scmp.lt.s32.totalorder (!%p215_p3), %s640_s12, 2  ;;  %vm320_vm0 = vcmask (!%p215_p3), 261120   ;;  %v650_v0 = vmov (!%p215_p3), 0.0   ;;  %vm651_vm1 = vmmov (!%p215_p3), 0   ;;  %vm419_vm2 = vcmask (!%p215_p3), 257024  }
   0x7   : > { %218 = sbr.rel (%p215_p3) target bundleno = 254 (0xfe), region = 32  ;;  %589 = vmatprep.subr.bf16.mxu0 (!%p215_p3), %v650_v0  ;;  %593 = vmatprep.mubr.msk.bf16.mxu0 (!%p215_p3), %vm651_vm1, %v650_v0  ;;  %321 = vst.msk [vmem:[#allocation2] sm:$0xff] (!%p215_p3), %vm320_vm0, %v650_v0  ;;  %322 = vst.msk [vmem:[#allocation2 + $0x8] sm:$0xff] (!%p215_p3), %vm320_vm0, %v650_v0 }
   0xe   : > { %s725_s12 = smov (!%p271_p4, %s640_s12), 2  ;;  %v323_v4 = vld [vmem:[#allocation2] sm:$0xff]  ;;  %v324_v6 = vld [vmem:[#allocation2 + $0x8] sm:$0xff] }
   0xf   : > { %s582_s16 = sshll.u32 %s725_s12, 4  ;;  %s581_s20 = sshll.u32 %s725_s12, 3 }
  0x10   : > { %s294_s19 = scalar_lea.vmem %s717_s1, %s582_s16  ;;  %s281_s23 = scalar_lea.vmem %s716_s0, %s581_s20 }
  0x11   : > { %v623_v1 = vld [vmem:[%s294_s19] sm:$0xff]   ;;  %v624_v2 = vld [vmem:[%s294_s19 + $0x8] sm:$0xff]   ;;  %s301_s26 = scalar_lea.vmem %s718_s2, %s725_s12  ;;  %s313_s29 = scalar_lea.vmem %s719_s3, %s581_s20 }
  0x12   : > { %590 = vmatpush3.bf16.msra.mxu0 %v623_v1  ;;  %v625_v3 = vld [vmem:[%s281_s23] sm:$0xff]  }
  0x13   : > { %591 = vmatprep.subr.bf16.mxu0 %v650_v0  ;;  %v576_v12 = vld [vmem:[%s301_s26] ss:$0 sm:$0xff] }
  0x16   : > { %592 = vmatpush3.bf16.msra.mxu0 %v624_v2 }
  0x19   : > { %594 = vmatmul.mubr.msk.bf16.vlgmr.msra.gmra.mrb[0].mxu0 %vm320_vm0, %v625_v3 }
  0xec   : > { %v386_v5 = vpop.f32.mrb[0].mxu0 }
  0xed   : > { %v393_v7 = vadd.f32 %v386_v5, %v323_v4  ;;  %v595_v8 = vpop.f32.mrb[1].mxu0 }
  0xee   : > { %v389_v9 = vpop.f32.mrb[2].mxu0 }
  0xef   : > { %395 = vst.msk [vmem:[#allocation2] sm:$0xff] %vm320_vm0, %v393_v7  ;;  %v394_v10 = vadd.f32 %v389_v9, %v324_v6  ;;  %v596_v11 = vpop.f32.mrb[3].mxu0 }
  0xf1   : > { %396 = vst.msk [vmem:[#allocation2 + $0x8] sm:$0xff] %vm320_vm0, %v394_v10 }
  0xf6   : > { %v400_v13 = vld [vmem:[#allocation2] sm:$0xff] }
  0xf7   : > { %v409_v14 = vadd.f32 %v576_v12, %v400_v13 }
  0xf8   : > { %v401_v15 = vld [vmem:[#allocation2 + $0x8] sm:$0xff] }
  0xf9   : > { %v584_v16 = vpack.c.bf16 %v409_v14, %v409_v14  ;;  %v410_v17 = vadd.f32 %v576_v12, %v401_v15 }
  0xfb   : > { %420 = vst.msk [vmem:[%s313_s29] sm:$0xf] %vm419_vm2, %v584_v16  ;;  %v585_v18 = vpack.c.bf16 %v410_v17, %v410_v17 }
  0xfd   : > { %421 = vst.msk [vmem:[%s313_s29 + $0x4] sm:$0xf] %vm419_vm2, %v585_v18 }
  0xfe PF: > { %s13_s14 = sadd.s32 1, %s648_s14   ;;  %s720_s12 = smov %s644_s13 }
  0xff   : > { %p10_p5 = scmp.ge.s32.totalorder %s13_s14, 5   ;;  %s721_s13 = smov %s723_s15 }
 0x101   :  { %12 = sbr.rel (!%p10_p5) target bundleno = 2 (0x2), region = 76 }

// kernel: multi_headed_attention.4
= control target key start
LH: loop header
LB: loop body
LE: loop exit
PB: predicated region body
PF: predicated region fallthrough
CT: control target
= control target key end

     0   :  { %s1254_s15 = smov 0   ;;  %s1256_s16 = smov 0   ;;  %s1435_s0 = inlined_call_operand.vmem [shape: bf16[2,8,32], index: 0, kind: input, shape index: {}]   ;;  %s1436_s1 = inlined_call_operand.vmem [shape: bf16[2,8,32], index: 1, kind: input, shape index: {}]   ;;  %s1437_s2 = inlined_call_operand.vmem [shape: bf16[2,8,32], index: 2, kind: input, shape index: {}]   ;;  %s1438_s3 = inlined_call_operand.vmem [shape: f32[2,1,8], index: 3, kind: input, shape index: {}]   ;;  %s1439_s4 = inlined_call_operand.vmem [shape: bf16[2,8,32], index: 4, kind: output, shape index: {}]  }
   0x1   :  { %s1258_s17 = smov 0  }
   0x2 LB: > { %s33_s18 = sadd.s32 1, %s1210_s16  ;;  %p1039_p0 = scmp.ge.s32.totalorder %s1214_s17, 1  ;;  %s1214_s17 = sphi %s1258_s17, %s14_s17   ;;  %s1210_s16 = sphi %s1256_s16, %s1441_s16   ;;  %s1206_s15 = sphi %s1254_s15, %s1440_s15  }
   0x3   : > { %p35_p1 = scmp.ge.s32.totalorder %s33_s18, 2  ;;  %p228_p2 = scmp.lt.s32.totalorder %s1214_s17, 3 }
   0x5   : > { %s1443_s18 = smov (%p35_p1, %s33_s18), 0  ;;  %p229_p3 = pnand %p1039_p0, %p228_p2 }
   0x6   : > { %p278_p4 = scmp.lt.s32.totalorder (!%p229_p3), %s1206_s15, 1  ;;  %v1216_v0 = vmov (!%p229_p3), 0.0   ;;  %vm1217_vm0 = vmmov (!%p229_p3), 0   ;;  %vm329_vm1 = vcmask (!%p229_p3), 64512   ;;  %vm319_vm2 = vcmask (!%p229_p3), 31744   ;;  %s1220_s29 = smov (!%p229_p3), 120  }
   0x7   : > { %232 = sbr.rel (%p229_p3) target bundleno = 1424 (0x590), region = 36  ;;  %1074 = vmatprep.subr.bf16.mxu0 (!%p229_p3), %v1216_v0  ;;  %1076 = vmatprep.mubr.msk.bf16.mxu0 (!%p229_p3), %vm1217_vm0, %v1216_v0  ;;  %v1218_v4 = vmov (!%p229_p3), -inf   ;;  %321 = vst.msk [vmem:[#allocation4] sm:$0xff] (!%p229_p3), %vm319_vm2, %v1216_v0  ;;  %v1219_v13 = vmov (!%p229_p3), 0   ;;  %s1221_s30 = smov (!%p229_p3), 112   ;;  %vm408_vm3 = vcmask (!%p229_p3), 1043456  }
   0x8   : > { %1080 = vmatprep.subr.bf16.mxu1 (!%p229_p3), %v1216_v0  ;;  %1082 = vmatprep.mubr.msk.bf16.mxu1 (!%p229_p3), %vm1217_vm0, %v1216_v0  ;;  %320 = vst.msk [vmem:[#allocation3] sm:$0xff] (!%p229_p3), %vm319_vm2, %v1218_v4  ;;  %s1222_s5 = smov (!%p229_p3), 104   ;;  %v1223_v60 = vmov (!%p229_p3), 1   ;;  %v1224_v61 = vmov (!%p229_p3), 2   ;;  %vm317_vm4 = vcmask (!%p229_p3), 261120   ;;  %vm864_vm5 = vcmask (!%p229_p3), 7168  }
   0x9   : > { %1159 = vset.pattern.permute.xlu0 (!%p229_p3), %v1219_v13  ;;  %1160 = vset.pattern.permute.xlu1 (!%p229_p3), %v1223_v60  ;;  %318 = vst.msk [vmem:[#allocation2] sm:$0xff] (!%p229_p3), %vm317_vm4, %v1216_v0  ;;  %vm866_vm6 = vcmask (!%p229_p3), 15360   ;;  %vm868_vm7 = vcmask (!%p229_p3), 23552   ;;  %s1226_s9 = smov (!%p229_p3), 8   ;;  %s1227_s10 = smov (!%p229_p3), 16   ;;  %vm877_vm8 = vcmask (!%p229_p3), 130048  }
   0xa   : > { %s1228_s11 = smov (!%p229_p3), 24   ;;  %vm879_vm9 = vcmask (!%p229_p3), 195584   ;;  %vm914_vm10 = vcmask (!%p229_p3), 257024  }
   0xe   : > { %s1445_s15 = smov (!%p278_p4, %s1206_s15), 1 }
   0xf   : > { %s1278_s19 = sshll.u32 %s1445_s15, 2  ;;  %s304_s28 = scalar_lea.vmem %s1438_s3, %s1445_s15  ;;  %v1310_v16 = vld [vmem:[#allocation3] sm:$0xff] }
  0x10   : > { %s291_s22 = scalar_lea.vmem %s1436_s1, %s1278_s19  ;;  %s284_s25 = scalar_lea.vmem %s1435_s0, %s1278_s19  ;;  %v1299_v6 = vld [vmem:[%s304_s28] ss:$0 sm:$0xff] }
  0x11   : > { %v323_v1 = vld [vmem:[%s291_s22] sm:$0xf]  ;;  %s298_s8 = scalar_lea.vmem %s1437_s2, %s1278_s19  ;;  %s311_s14 = scalar_lea.vmem %s1439_s4, %s1278_s19 }
  0x12   : > { %v334_v2 = vsel %vm329_vm1, %v323_v1, 0  ;;  %v322_v3 = vld [vmem:[%s284_s25] sm:$0xf]  ;;  %v1048_v14 = vcombine.low %v323_v1, %v323_v1 }
  0x13   : > { %1075 = vmatpush3.bf16.xpose.msra.mxu0 %v334_v2  ;;  %v1047_v15 = vcombine.low %v322_v3, %v322_v3  ;;  %v1320_v19 = vld [vmem:[%s298_s8] sm:$0xf] }
  0x14   : > { %1092 = vmatprep.subr.bf16.mxu0 %v1216_v0  ;;  %467 = vrot.lane.b32.xlu1 %v1048_v14, %s1220_s29  ;;  %v410_v20 = vsel %vm408_vm3, %v1320_v19, 0 }
  0x15   : > { %1081 = vmatpush3.bf16.msra.mxu1 %v410_v20 }
  0x16   : > { %1086 = vmatprep.subr.bf16.mxu1 %v1216_v0 }
  0x18   : > { %462 = vrot.lane.b32.xlu1 %v1047_v15, %s1220_s29 }
  0x1a   : > { %1077 = vmatmul.mubr.msk.bf16.vlgmr.msra.gmra.mrb[0].mxu0 %vm329_vm1, %v322_v3  ;;  %v1225_v3 = vmov 3  }
  0x1b   : > { %1094 = vmatprep.mubr.msk.bf16.mxu0 %vm1217_vm0, %v1216_v0 }
  0x1c   : > { %602 = vrot.lane.b32.xlu1 %v1048_v14, %s1221_s30 }
  0x20   : > { %600 = vrot.lane.b32.xlu1 %v1047_v15, %s1221_s30 }
  0x24   : > { %734 = vrot.lane.b32.xlu1 %v1048_v14, %s1222_s5 }
  0x28   : > { %732 = vrot.lane.b32.xlu1 %v1047_v15, %s1222_s5 }
  0x86   : > { %v468_v24 = vpop.permute.xlu1 %467 }
  0x87   : > { %v473_v27 = vsel %vm329_vm1, %v468_v24, 0 }
  0x8a   : > { %v463_v25 = vpop.permute.xlu1 %462 }
  0x8e   : > { %v603_v29 = vpop.permute.xlu1 %602 }
  0x8f   : > { %v608_v31 = vsel %vm329_vm1, %v603_v29, 0 }
  0x92   : > { %v601_v30 = vpop.permute.xlu1 %600 }
  0x96   : > { %v735_v32 = vpop.permute.xlu1 %734 }
  0x97   : > { %v740_v33 = vsel %vm329_vm1, %v735_v32, 0 }
  0x9a   : > { %v733_v34 = vpop.permute.xlu1 %732 }
  0xed   : > { %v370_v5 = vpop.f32.mrb[0].mxu0 }
  0xee   : > { %v376_v7 = vmul.f32 0.35355338, %v370_v5  ;;  %v1078_v8 = vpop.f32.mrb[1].mxu0 }
  0xef   : > { %v373_v9 = vpop.f32.mrb[2].mxu0 }
  0xf0   : > { %v1079_v10 = vpop.f32.mrb[3].mxu0  ;;  %v383_v11 = vadd.f32 %v1299_v6, %v376_v7 }
  0xf2   : > { %v384_v12 = vsel %vm329_vm1, %v383_v11, -inf }
  0xf3   : > { %385 = vmax.xlane.f32.xlu0 %v384_v12 }
 0x180   : > { %v386_v17 = vpop.xlane.xlu0 %385 }
 0x181   : > { %v1313_v18 = vmax.f32 %v1310_v16, %v386_v17 }
 0x183   : > { %393 = vperm.xlu0 %1159, %v1313_v18   ;;  %v388_v62 = vsub.f32 %v1310_v16, %v1313_v18 }
 0x185   : > { %v389_v1 = vmul.f32 1.442695, %v388_v62 }
 0x187   : > { %1161 = vset.pattern.permute.xlu0 %v1224_v61 }
 0x202   : > { %v394_v21 = vpop.permute.xlu0 %393 }
 0x203   : > { %v396_v22 = vsub.f32 %v383_v11, %v394_v21  ;;  %v1050_v11 = vcombine.low %v1320_v19, %v1320_v19 }
 0x205   : > { %v397_v23 = vmul.f32 1.442695, %v396_v22 }
 0x207   : > { %1174 = vpow2.f32 %v397_v23 }
 0x208   : > { %1176 = vpow2.f32 %v389_v1 }
 0x211   : > { %v1325_v26 = vpop.eup %1174 }
 0x212   : > { %v404_v28 = vpack.c.bf16 %v1325_v26, %v1325_v26  ;;  %v400_v14 = vsel %vm329_vm1, %v1325_v26, 0.0 }
 0x214   : > { %1083 = vmatmul.mubr.msk.bf16.vlgmr.msra.gmra.mrb[0].mxu1 %vm329_vm1, %v404_v28 }
 0x215   : > { %1087 = vmatpush3.bf16.xpose.msra.mxu1 %v473_v27  ;;  %1088 = vmatprep.mubr.msk.bf16.mxu1 %vm1217_vm0, %v1216_v0 }
 0x216   : > { %1098 = vmatprep.subr.bf16.mxu1 %v1216_v0 }
 0x21c   : > { %1089 = vmatmul.mubr.msk.bf16.vlgmr.msra.gmra.mrb[4].mxu1 %vm329_vm1, %v463_v25 }
 0x21d   : > { %1099 = vmatpush3.bf16.xpose.msra.mxu1 %v608_v31  ;;  %1100 = vmatprep.mubr.msk.bf16.mxu1 %vm1217_vm0, %v1216_v0 }
 0x21e   : > { %1110 = vmatprep.subr.bf16.mxu1 %v1216_v0 }
 0x224   : > { %1101 = vmatmul.mubr.msk.bf16.vlgmr.msra.gmra.mrb[8].mxu1 %vm329_vm1, %v601_v30 }
 0x225   : > { %1111 = vmatpush3.bf16.xpose.msra.mxu1 %v740_v33  ;;  %1112 = vmatprep.mubr.msk.bf16.mxu1 %vm1217_vm0, %v1216_v0 }
 0x22c   : > { %1113 = vmatmul.mubr.msk.bf16.vlgmr.msra.gmra.mrb[12].mxu1 %vm329_vm1, %v733_v34 }
 0x2e7   : > { %v1344_v35 = vpop.f32.mrb[0].mxu1 }
 0x2e8   : > { %v1084_v36 = vpop.f32.mrb[1].mxu1 }
 0x2e9   : > { %v449_v37 = vpop.f32.mrb[2].mxu1 }
 0x2ea   : > { %v1085_v38 = vpop.f32.mrb[3].mxu1 }
 0x2ef   : > { %v509_v39 = vpop.f32.mrb[4].mxu1 }
 0x2f0   : > { %v515_v40 = vmul.f32 0.35355338, %v509_v39  ;;  %v1090_v41 = vpop.f32.mrb[5].mxu1 }
 0x2f1   : > { %v512_v42 = vpop.f32.mrb[6].mxu1 }
 0x2f2   : > { %v1091_v43 = vpop.f32.mrb[7].mxu1  ;;  %v516_v44 = vadd.f32 %v1299_v6, %v515_v40 }
 0x2f4   : > { %v517_v45 = vsel %vm329_vm1, %v516_v44, -inf }
 0x2f5   : > { %518 = vmax.xlane.f32.xlu1 %v517_v45 }
 0x2f7   : > { %v644_v46 = vpop.f32.mrb[8].mxu1 }
 0x2f8   : > { %v650_v47 = vmul.f32 0.35355338, %v644_v46  ;;  %v1102_v48 = vpop.f32.mrb[9].mxu1 }
 0x2f9   : > { %v647_v49 = vpop.f32.mrb[10].mxu1 }
 0x2fa   : > { %v1103_v50 = vpop.f32.mrb[11].mxu1  ;;  %v651_v51 = vadd.f32 %v1299_v6, %v650_v47 }
 0x2fb   : > { %v327_v50 = vld [vmem:[#allocation4] sm:$0xff] }
 0x2fc   : > { %v652_v52 = vsel %vm329_vm1, %v651_v51, -inf }
 0x2fd   : > { %653 = vmax.xlane.f32.xlu0 %v652_v52 }
 0x2ff   : > { %v776_v53 = vpop.f32.mrb[12].mxu1 }
 0x300   : > { %v782_v54 = vmul.f32 0.35355338, %v776_v53  ;;  %v1114_v55 = vpop.f32.mrb[13].mxu1 }
 0x301   : > { %v779_v56 = vpop.f32.mrb[14].mxu1 }
 0x302   : > { %v1115_v57 = vpop.f32.mrb[15].mxu1  ;;  %v783_v58 = vadd.f32 %v1299_v6, %v782_v54  ;;  %v1364_v6 = vpop.eup %1176 }
 0x303   : > { %v399_v55 = vmul.f32 %v1364_v6, %v327_v50 }
 0x304   : > { %v784_v59 = vsel %vm329_vm1, %v783_v58, -inf }
 0x305   : > { %785 = vmax.xlane.f32.xlu1 %v784_v59 }
 0x382   : > { %v519_v63 = vpop.xlane.xlu1 %518 }
 0x383   : > { %v1357_v2 = vmax.f32 %v1310_v16, %v519_v63 }
 0x385   : > { %526 = vperm.xlu1 %1160, %v1357_v2   ;;  %v865_v8 = vsel %vm864_vm5, %v1313_v18, %v1357_v2  ;;  %v521_v39 = vsub.f32 %v1310_v16, %v1357_v2 }
 0x387   : > { %v522_v43 = vmul.f32 1.442695, %v521_v39 }
 0x389   : > { %1162 = vset.pattern.permute.xlu1 %v1225_v3 }
 0x38a   : > { %v654_v4 = vpop.xlane.xlu0 %653 }
 0x38b   : > { %v655_v5 = vmax.f32 %v1310_v16, %v654_v4 }
 0x38d   : > { %661 = vperm.xlu0 %1161, %v655_v5   ;;  %v867_v10 = vsel %vm866_vm6, %v865_v8, %v655_v5  ;;  %v656_v28 = vsub.f32 %v1310_v16, %v655_v5 }
 0x38f   : > { %v657_v32 = vmul.f32 1.442695, %v656_v28 }
 0x391   : > { %1163 = vset.pattern.permute.xlu0 %v1219_v13 }
 0x392   : > { %v786_v7 = vpop.xlane.xlu1 %785  ;;  %454 = vperm.xlu0 %1163, %v1364_v6  }
 0x393   : > { %v787_v9 = vmax.f32 %v1310_v16, %v786_v7 }
 0x395   : > { %v869_v12 = vsel %vm868_vm7, %v867_v10, %v787_v9  ;;  %793 = vperm.xlu1 %1162, %v787_v9  }
 0x396   : > { %871 = vst.msk [vmem:[#allocation3] sm:$0xff] %vm319_vm2, %v869_v12  ;;  %1165 = vset.pattern.permute.xlu0 %v1224_v61 }
 0x399   : > { %541 = vrot.lane.b32.xlu1 %v1050_v11, %s1220_s29 }
 0x39a   : > { %1164 = vset.pattern.permute.xlu1 %v1223_v60 }
 0x39d   : > { %673 = vrot.lane.b32.xlu1 %v1050_v11, %s1221_s30 }
 0x3a1   : > { %805 = vrot.lane.b32.xlu1 %v1050_v11, %s1222_s5 }
 0x3c5   : > { %401 = vadd.xlane.f32.xlu1 %v400_v14 }
 0x404   : > { %v527_v15 = vpop.permute.xlu1 %526 }
 0x405   : > { %v529_v17 = vsub.f32 %v516_v44, %v527_v15  ;;  %v788_v44 = vsub.f32 %v1310_v16, %v787_v9 }
 0x407   : > { %v530_v18 = vmul.f32 1.442695, %v529_v17  ;;  %v789_v47 = vmul.f32 1.442695, %v788_v44 }
 0x409   : > { %1178 = vpow2.f32 %v530_v18 }
 0x40c   : > { %v662_v19 = vpop.permute.xlu0 %661 }
 0x40d   : > { %v664_v20 = vsub.f32 %v651_v51, %v662_v19 }
 0x40f   : > { %v665_v21 = vmul.f32 1.442695, %v664_v20 }
 0x411   : > { %1180 = vpow2.f32 %v665_v21 }
 0x413   : > { %v1179_v22 = vpop.eup %1178 }
 0x414   : > { %v794_v23 = vpop.permute.xlu1 %793  ;;  %v533_v24 = vsel %vm329_vm1, %v1179_v22, 0.0  ;;  %v537_v31 = vpack.c.bf16 %v1179_v22, %v1179_v22 }
 0x415   : > { %v796_v25 = vsub.f32 %v783_v58, %v794_v23  ;;  %534 = vadd.xlane.f32.xlu0 %v533_v24  ;;  %v328_v23 = vld [vmem:[#allocation2] sm:$0xff] }
 0x417   : > { %v797_v27 = vmul.f32 1.442695, %v796_v25 }
 0x418   : > { %v542_v29 = vpop.permute.xlu1 %541 }
 0x419   : > { %1182 = vpow2.f32 %v797_v27  ;;  %v547_v26 = vsel %vm408_vm3, %v542_v29, 0 }
 0x41a   : > { %1093 = vmatpush3.bf16.msra.mxu0 %v547_v26  ;;  %1184 = vpow2.f32 %v657_v32 }
 0x41b   : > { %v1181_v30 = vpop.eup %1180  ;;  %1104 = vmatprep.subr.bf16.mxu0 %v1216_v0  ;;  %1186 = vpow2.f32 %v522_v43 }
 0x41c   : > { %v668_v33 = vsel %vm329_vm1, %v1181_v30, 0.0  ;;  %v674_v34 = vpop.permute.xlu1 %673  ;;  %v672_v40 = vpack.c.bf16 %v1181_v30, %v1181_v30  ;;  %1188 = vpow2.f32 %v789_v47 }
 0x41d   : > { %1095 = vmatmul.mubr.msk.bf16.vlgmr.msra.gmra.mrb[4].mxu0 %vm329_vm1, %v537_v31  ;;  %669 = vadd.xlane.f32.xlu1 %v668_v33  ;;  %v679_v36 = vsel %vm408_vm3, %v674_v34, 0 }
 0x41e   : > { %1105 = vmatpush3.bf16.msra.mxu0 %v679_v36  ;;  %1106 = vmatprep.mubr.msk.bf16.mxu0 %vm1217_vm0, %v1216_v0 }
 0x41f   : > { %1116 = vmatprep.subr.bf16.mxu0 %v1216_v0 }
 0x420   : > { %v806_v37 = vpop.permute.xlu1 %805 }
 0x421   : > { %v811_v41 = vsel %vm408_vm3, %v806_v37, 0 }
 0x423   : > { %v1183_v38 = vpop.eup %1182 }
 0x424   : > { %v800_v42 = vsel %vm329_vm1, %v1183_v38, 0.0  ;;  %v1185_v45 = vpop.eup %1184  ;;  %v804_v46 = vpack.c.bf16 %v1183_v38, %v1183_v38 }
 0x425   : > { %1107 = vmatmul.mubr.msk.bf16.vlgmr.msra.gmra.mrb[8].mxu0 %vm329_vm1, %v672_v40  ;;  %801 = vadd.xlane.f32.xlu1 %v800_v42  ;;  %v1187_v48 = vpop.eup %1186  ;;  %v667_v54 = vmul.f32 %v1185_v45, %v327_v50 }
 0x426   : > { %1117 = vmatpush3.bf16.msra.mxu0 %v811_v41  ;;  %1118 = vmatprep.mubr.msk.bf16.mxu0 %vm1217_vm0, %v1216_v0  ;;  %v1189_v49 = vpop.eup %1188  ;;  %v455_v0 = vpop.permute.xlu0 %454  ;;  %v532_v52 = vmul.f32 %v1187_v48, %v327_v50 }
 0x427   : > { %v799_v59 = vmul.f32 %v1189_v49, %v327_v50  ;;  %v457_v25 = vmul.f32 %v455_v0, %v328_v23 }
 0x429   : > { %v458_v31 = vadd.f32 %v457_v25, %v1344_v35 }
 0x42b   : > { %723 = vperm.xlu0 %1165, %v1185_v45  }
 0x42d   : > { %1119 = vmatmul.mubr.msk.bf16.vlgmr.msra.gmra.mrb[12].mxu0 %vm329_vm1, %v804_v46 }
 0x42f   : > { %1171 = vset.pattern.permute.xlu0 %v1225_v3 }
 0x436   : > { %591 = vperm.xlu1 %1164, %v1187_v48  }
 0x43a   : > { %1166 = vset.pattern.permute.xlu1 %v1225_v3 }
 0x43b   : > { %855 = vperm.xlu1 %1166, %v1189_v49  }
 0x43f   : > { %1167 = vset.pattern.permute.xlu1 %v1219_v13 }
 0x452   : > { %v402_v16 = vpop.xlane.xlu1 %401 }
 0x453   : > { %v403_v58 = vadd.f32 %v402_v16, %v399_v55 }
 0x4a2   : > { %v535_v51 = vpop.xlane.xlu0 %534 }
 0x4a3   : > { %v536_v56 = vadd.f32 %v535_v51, %v532_v52 }
 0x4a5   : > { %v872_v63 = vsel %vm864_vm5, %v403_v58, %v536_v56 }
 0x4aa   : > { %v670_v53 = vpop.xlane.xlu1 %669  ;;  %v724_v24 = vpop.permute.xlu0 %723 }
 0x4ab   : > { %v671_v57 = vadd.f32 %v670_v53, %v667_v54  ;;  %v726_v29 = vmul.f32 %v724_v24, %v328_v23 }
 0x4ad   : > { %v873_v2 = vsel %vm866_vm6, %v872_v63, %v671_v57 }
 0x4b2   : > { %v802_v62 = vpop.xlane.xlu1 %801 }
 0x4b3   : > { %v803_v1 = vadd.f32 %v802_v62, %v799_v59 }
 0x4b5   : > { %v874_v13 = vsel %vm868_vm7, %v873_v2, %v803_v1 }
 0x4b6   : > { %875 = vst.msk [vmem:[#allocation4] sm:$0xff] %vm319_vm2, %v874_v13 }
 0x4bd   : > { %v886_v4 = vld [vmem:[#allocation4] sm:$0xff] }
 0x4be   : > { %1190 = vrcp.f32 %v886_v4 }
 0x4c8   : > { %v1191_v5 = vpop.eup %1190 }
 0x4c9   : > { %891 = vperm.xlu1 %1167, %v1191_v5  }
 0x4cd   : > { %1168 = vset.pattern.permute.xlu1 %v1223_v60 }
 0x4ce   : > { %896 = vperm.xlu1 %1168, %v1191_v5  }
 0x4d2   : > { %1169 = vset.pattern.permute.xlu1 %v1224_v61  ;;  %v592_v61 = vpop.permute.xlu1 %591 }
 0x4d3   : > { %v594_v27 = vmul.f32 %v592_v61, %v328_v23 }
 0x4d6   : > { %v856_v19 = vpop.permute.xlu1 %855 }
 0x4d7   : > { %v858_v32 = vmul.f32 %v856_v19, %v328_v23 }
 0x4f0   : > { %v583_v6 = vpop.f32.mrb[4].mxu0 }
 0x4f1   : > { %596 = vrot.lane.b32.xlu1 %v583_v6, %s1226_s9  ;;  %v1096_v7 = vpop.f32.mrb[5].mxu0 }
 0x4f2   : > { %v586_v8 = vpop.f32.mrb[6].mxu0 }
 0x4f3   : > { %v1097_v9 = vpop.f32.mrb[7].mxu0 }
 0x4f8   : > { %v715_v10 = vpop.f32.mrb[8].mxu0 }
 0x4f9   : > { %728 = vrot.lane.b32.xlu1 %v715_v10, %s1227_s10  ;;  %v1108_v11 = vpop.f32.mrb[9].mxu0 }
 0x4fa   : > { %v718_v12 = vpop.f32.mrb[10].mxu0 }
 0x4fb   : > { %v1109_v14 = vpop.f32.mrb[11].mxu0 }
 0x500   : > { %v847_v15 = vpop.f32.mrb[12].mxu0 }
 0x501   : > { %860 = vrot.lane.b32.xlu1 %v847_v15, %s1228_s11  ;;  %v1120_v17 = vpop.f32.mrb[13].mxu0 }
 0x502   : > { %v850_v60 = vpop.f32.mrb[14].mxu0 }
 0x503   : > { %v1121_v18 = vpop.f32.mrb[15].mxu0 }
 0x505   : > { %901 = vperm.xlu1 %1169, %v1191_v5  }
 0x509   : > { %1170 = vset.pattern.permute.xlu1 %v1225_v3 }
 0x50a   : > { %906 = vperm.xlu1 %1170, %v1191_v5  }
 0x548   : > { %v892_v20 = vpop.permute.xlu1 %891 }
 0x54d   : > { %v897_v21 = vpop.permute.xlu1 %896 }
 0x563   : > { %v597_v22 = vpop.permute.xlu1 %596 }
 0x564   : > { %v599_v26 = vadd.f32 %v597_v22, %v594_v27 }
 0x566   : > { %v876_v33 = vsel %vm329_vm1, %v458_v31, %v599_v26 }
 0x56b   : > { %v729_v28 = vpop.permute.xlu1 %728 }
 0x56c   : > { %v731_v30 = vadd.f32 %v729_v28, %v726_v29 }
 0x56e   : > { %v878_v36 = vsel %vm877_vm8, %v876_v33, %v731_v30 }
 0x573   : > { %v861_v3 = vpop.permute.xlu1 %860 }
 0x574   : > { %v863_v34 = vadd.f32 %v861_v3, %v858_v32 }
 0x576   : > { %v880_v37 = vsel %vm879_vm9, %v878_v36, %v863_v34 }
 0x577   : > { %882 = vst.msk [vmem:[#allocation2] sm:$0xff] %vm317_vm4, %v880_v37 }
 0x57e   : > { %v887_v38 = vld [vmem:[#allocation2] sm:$0xff] }
 0x57f   : > { %v894_v40 = vmul.f32 %v892_v20, %v887_v38  ;;  %v899_v41 = vmul.f32 %v897_v21, %v887_v38 }
 0x581   : > { %v910_v43 = vsel %vm329_vm1, %v894_v40, %v899_v41 }
 0x584   : > { %v902_v39 = vpop.permute.xlu1 %901 }
 0x585   : > { %v904_v42 = vmul.f32 %v902_v39, %v887_v38 }
 0x587   : > { %v911_v45 = vsel %vm877_vm8, %v910_v43, %v904_v42 }
 0x589   : > { %v907_v35 = vpop.permute.xlu1 %906 }
 0x58a   : > { %v909_v44 = vmul.f32 %v907_v35, %v887_v38 }
 0x58c   : > { %v912_v46 = vsel %vm879_vm9, %v911_v45, %v909_v44 }
 0x58d   : > { %v913_v47 = vpack.c.bf16 %v912_v46, %v912_v46 }
 0x58f   : > { %915 = vst.msk [vmem:[%s311_s14] sm:$0xf] %vm914_vm10, %v913_v47 }
 0x590 PF: > { %s14_s17 = sadd.s32 1, %s1214_s17   ;;  %s1440_s15 = smov %s1210_s16 }
 0x591   : > { %p11_p5 = scmp.ge.s32.totalorder %s14_s17, 4   ;;  %s1441_s16 = smov %s1443_s18 }
 0x593   :  { %13 = sbr.rel (!%p11_p5) target bundleno = 2 (0x2), region = 83 }

</bundles_post_ra>
